<compile_context>
chip_gen: v5e
topology: v5e:2x2
jax: 0.10.0
libtpu: 0.0.40
codegen_flags: <defaults>
</compile_context>

<pallas_src>
import jax
import jax.numpy as jnp
from jax import lax
from jax.experimental import pallas as pl
from jax.experimental.pallas import tpu as pltpu


def _netvlad_kernel(x_ref, wc_ref, wc2_ref, shift_ref, out_ref):
    """NetVLAD core for a block of `bt` batch elements.

    x_ref:     (bt, F, S)  features, f32
    wc_ref:    (F, K)      cluster_weights with BN scale folded in (matmul dtype)
    wc2_ref:   (F, K)      cluster_weights2, f32
    shift_ref: (1, K)      folded BN shift, f32
    out_ref:   (bt, F, K)  intra-normalized VLAD descriptor, f32
    """
    wc = wc_ref[...]
    wc2 = wc2_ref[...]
    shift = shift_ref[...]
    mm_dtype = wc.dtype

    for b in range(x_ref.shape[0]):          # static unroll over the batch block
        xb = x_ref[b].astype(mm_dtype)       # (F, S)

        # soft-assignment logits: x^T @ (wc * bn_scale), contraction over F  [MXU]
        logits = lax.dot_general(
            xb, wc, (((0,), (0,)), ((), ())),
            preferred_element_type=jnp.float32)            # (S, K)
        logits = logits + shift                            # BN shift (scale folded)

        # softmax over clusters (lane axis); divide -> EUP reciprocal-multiply
        logits = logits - jnp.max(logits, axis=-1, keepdims=True)
        e = jnp.exp(logits)
        p = e * pl.reciprocal(jnp.sum(e, axis=-1, keepdims=True), approx=True)

        # a = a_sum * cluster_weights2
        a = jnp.sum(p, axis=0, keepdims=True) * wc2        # (1,K)*(F,K) -> (F,K)

        # vlad = x @ p, contraction over S  [MXU, canonical layout]
        vlad = jnp.dot(xb, p.astype(mm_dtype),
                       preferred_element_type=jnp.float32)  # (F, K)
        vlad = vlad - a

        # F.normalize(vlad, dim=1, p=2): L2 over F per cluster column (EUP rsqrt)
        ssq = jnp.sum(vlad * vlad, axis=0, keepdims=True)   # (1, K)
        vlad = vlad * lax.rsqrt(jnp.maximum(ssq, 1e-24))
        out_ref[b] = vlad.astype(out_ref.dtype)


def _pick_block_b(batch):
    # Amortize the ~0.35us/step pipeline overhead by processing several batch
    # elements per grid step, but keep >= 2 grid steps so both TensorCores on
    # v7x get work along the "parallel" batch axis.
    for bt in (8, 4, 2):
        if batch % bt == 0 and batch // bt >= 2:
            return bt
    return 1


def netvlad_base_forward(x_nchw, cluster_weights, cluster_weights2,
                         bn_gamma, bn_beta, bn_mean, bn_var, *,
                         eps=1e-5, block_b=None, matmul_dtype=jnp.bfloat16):
    """NetVLADBase.forward (eval-mode BN).  x_nchw: (B, C, H, W) float32."""
    B, C, H, W = x_nchw.shape
    F_, K = cluster_weights.shape
    assert C == F_
    S = H * W  # max_samples

    # Zero-copy layout: NCHW -> (B, F, S).  S ordering differs from PyTorch's
    # (W, H) but the forward is permutation-invariant in S (checked vs ref).
    x_bfs = x_nchw.reshape(B, F_, S)

    # Fold eval-mode BN into the cluster weights (scale) + a per-cluster shift.
    inv_std = bn_gamma / jnp.sqrt(bn_var + eps)
    wc_scaled = (cluster_weights.astype(jnp.float32)
                 * inv_std[None, :]).astype(matmul_dtype)            # (F, K)
    shift = (bn_beta - bn_mean * inv_std).reshape(1, K).astype(jnp.float32)
    wc2 = cluster_weights2.reshape(F_, K).astype(jnp.float32)

    bt = _pick_block_b(B) if block_b is None else block_b
    assert B % bt == 0, "batch must be divisible by block_b"

    # TODO(synk): for production sizes (large S, F) tile S with an inner
    # "arbitrary" grid axis (accumulating vlad and a_sum) to stay inside the
    # ~32 MiB scoped VMEM on v7x; unnecessary at these block sizes.
    vlad_bfk = pl.pallas_call(
        _netvlad_kernel,
        out_shape=jax.ShapeDtypeStruct((B, F_, K), jnp.float32),
        grid_spec=pltpu.PrefetchScalarGridSpec(
            num_scalar_prefetch=0,
            grid=(B // bt,),
            in_specs=[
                pl.BlockSpec((bt, F_, S), lambda i: (i, 0, 0)),   # x
                pl.BlockSpec((F_, K), lambda i: (0, 0)),          # wc (BN-scaled)
                pl.BlockSpec((F_, K), lambda i: (0, 0)),          # cluster_weights2
                pl.BlockSpec((1, K), lambda i: (0, 0)),           # bn shift
            ],
            out_specs=pl.BlockSpec((bt, F_, K), lambda i: (i, 0, 0)),
        ),
        compiler_params=pltpu.CompilerParams(
            dimension_semantics=("parallel",)),
    )(x_bfs, wc_scaled, wc2, shift)

    # vlad.view(-1, cluster_size * feature_size): (B, F, K) row-major flatten
    return vlad_bfk.reshape(B, F_ * K)


def netvlad_base_reference(x_nchw, cluster_weights, cluster_weights2,
                           bn_gamma, bn_beta, bn_mean, bn_var, *, eps=1e-5):
    """Pure-JAX reference mirroring the PyTorch forward (eval-mode BN)."""
    B, C, H, W = x_nchw.shape
    F_, K = cluster_weights.shape
    S = W * H
    x = jnp.transpose(x_nchw, (0, 3, 2, 1)).reshape(B, S, F_)
    act = jnp.einsum('bsf,fk->bsk', x, cluster_weights,
                     precision=lax.Precision.HIGHEST)
    scale = bn_gamma / jnp.sqrt(bn_var + eps)
    act = act * scale + (bn_beta - bn_mean * scale)
    act = jax.nn.softmax(act, axis=-1)
    a_sum = act.sum(axis=1, keepdims=True)                   # (B, 1, K)
    a = a_sum * cluster_weights2                             # (B, F, K)
    vlad = jnp.einsum('bsk,bsf->bfk', act, x,
                      precision=lax.Precision.HIGHEST)       # (B, F, K)
    vlad = vlad - a
    norm = jnp.sqrt(jnp.sum(vlad * vlad, axis=1, keepdims=True))
    vlad = vlad / jnp.maximum(norm, 1e-12)
    return vlad.reshape(B, -1)


if __name__ == "__main__":
    # small, TPU-friendly sizes
    B = 4
    feature_size = 128   # C
    H = W = 8
    max_samples = H * W  # 64
    cluster_size = 128
    output_dim = 256     # defined by the module but unused in forward()

    key = jax.random.PRNGKey(0)
    k_x, k_wc, k_wc2, k_g, k_b, k_m, k_v = jax.random.split(key, 7)

    x = jax.random.normal(k_x, (B, feature_size, H, W), dtype=jnp.float32)

    inv_sqrt_f = 1.0 / jnp.sqrt(jnp.float32(feature_size))
    cluster_weights = (jax.random.normal(k_wc, (feature_size, cluster_size),
                                         dtype=jnp.float32) * inv_sqrt_f)
    cluster_weights2 = (jax.random.normal(k_wc2, (1, feature_size, cluster_size),
                                          dtype=jnp.float32) * inv_sqrt_f)

    # BatchNorm1d(cluster_size) running stats / affine (eval mode), randomized
    # slightly so the scale/shift folding is actually exercised.
    bn_gamma = 1.0 + 0.1 * jax.random.normal(k_g, (cluster_size,), jnp.float32)
    bn_beta = 0.1 * jax.random.normal(k_b, (cluster_size,), jnp.float32)
    bn_mean = 0.1 * jax.random.normal(k_m, (cluster_size,), jnp.float32)
    bn_var = 1.0 + 0.5 * jax.random.uniform(k_v, (cluster_size,), jnp.float32)

    args = (x, cluster_weights, cluster_weights2,
            bn_gamma, bn_beta, bn_mean, bn_var)

    ref = jax.block_until_ready(netvlad_base_reference(*args))

    # f32-MXU path: tight check of kernel logic / layout change.
    out_f32 = jax.block_until_ready(
        netvlad_base_forward(*args, matmul_dtype=jnp.float32))
    assert out_f32.shape == (B, cluster_size * feature_size)
    assert jnp.allclose(out_f32, ref, atol=2e-3, rtol=2e-3), \
        float(jnp.max(jnp.abs(out_f32 - ref)))

    # default path: bf16 MXU inputs, f32 accumulation (looser tolerance for bf16).
    out = jax.block_until_ready(netvlad_base_forward(*args))
    assert out.shape == (B, cluster_size * feature_size)
    assert jnp.allclose(out, ref, atol=5e-3, rtol=5e-3), \
        float(jnp.max(jnp.abs(out - ref)))

    print("KERNEL_OK")
</pallas_src>

<mosaic_0001>
module attributes {stable_mosaic.version = 11 : i64} {
  func.func @_netvlad_kernel(%arg0: i32, %arg1: memref<2x128x64xf32, #tpu.memory_space<vmem>>, %arg2: memref<128x128xf32, #tpu.memory_space<vmem>>, %arg3: memref<128x128xf32, #tpu.memory_space<vmem>>, %arg4: memref<1x128xf32, #tpu.memory_space<vmem>>, %arg5: memref<2x128x128xf32, #tpu.memory_space<vmem>>) attributes {dimension_semantics = [#tpu.dimension_semantics<parallel>], iteration_bounds = array<i64: 2>, scalar_prefetch = 0 : i64, scratch_operands = 0 : i64, tpu.core_type = #tpu.core_type<tc>, window_params = [{transform_indices = @transform_0, window_bounds = array<i64: 2, 128, 64>}, {pipeline_mode = #tpu.pipeline_mode<synchronous>, transform_indices = @transform_1, window_bounds = array<i64: 128, 128>}, {pipeline_mode = #tpu.pipeline_mode<synchronous>, transform_indices = @transform_2, window_bounds = array<i64: 128, 128>}, {pipeline_mode = #tpu.pipeline_mode<synchronous>, transform_indices = @transform_3, window_bounds = array<i64: 1, 128>}, {transform_indices = @transform_4, window_bounds = array<i64: 2, 128, 128>}]} {
    %c0 = arith.constant 0 : index
    %c0_0 = arith.constant 0 : index
    %0 = vector.load %arg2[%c0, %c0_0] : memref<128x128xf32, #tpu.memory_space<vmem>>, vector<128x128xf32>
    %c0_1 = arith.constant 0 : index
    %c0_2 = arith.constant 0 : index
    %1 = vector.load %arg3[%c0_1, %c0_2] : memref<128x128xf32, #tpu.memory_space<vmem>>, vector<128x128xf32>
    %c0_3 = arith.constant 0 : index
    %c0_4 = arith.constant 0 : index
    %2 = vector.load %arg4[%c0_3, %c0_4] : memref<1x128xf32, #tpu.memory_space<vmem>>, vector<1x128xf32>
    %c0_5 = arith.constant 0 : index
    %c0_6 = arith.constant 0 : index
    %c0_7 = arith.constant 0 : index
    %3 = vector.load %arg1[%c0_5, %c0_6, %c0_7] : memref<2x128x64xf32, #tpu.memory_space<vmem>>, vector<1x128x64xf32>
    %4 = vector.shape_cast %3 : vector<1x128x64xf32> to vector<128x64xf32>
    %cst = arith.constant dense<0.000000e+00> : vector<64x128xf32>
    %5 = tpu.matmul %4, %0, %cst {dimension_numbers = #tpu.dot_dimension_numbers<[0], [0], [1], [1], [0, 1, 1, 1], [], []>} : vector<128x64xf32>, vector<128x128xf32>, vector<64x128xf32> -> vector<64x128xf32>
    %6 = vector.broadcast %2 : vector<1x128xf32> to vector<64x128xf32>
    %7 = arith.addf %5, %6 : vector<64x128xf32>
    %cst_8 = arith.constant dense<0xFF800000> : vector<64xf32>
    %8 = vector.multi_reduction <maximumf>, %7, %cst_8 [1] : vector<64x128xf32> to vector<64xf32>
    %9 = vector.shape_cast %8 : vector<64xf32> to vector<64x1xf32>
    %10 = vector.broadcast %9 : vector<64x1xf32> to vector<64x128xf32>
    %11 = arith.subf %7, %10 : vector<64x128xf32>
    %12 = math.exp %11 : vector<64x128xf32>
    %cst_9 = arith.constant dense<0.000000e+00> : vector<64xf32>
    %13 = vector.multi_reduction <add>, %12, %cst_9 [1] : vector<64x128xf32> to vector<64xf32>
    %14 = vector.shape_cast %13 : vector<64xf32> to vector<64x1xf32>
    %15 = tpu.reciprocal %14 {approx = true} : vector<64x1xf32> -> vector<64x1xf32>
    %16 = vector.broadcast %15 : vector<64x1xf32> to vector<64x128xf32>
    %17 = arith.mulf %12, %16 : vector<64x128xf32>
    %cst_10 = arith.constant dense<0.000000e+00> : vector<128xf32>
    %18 = vector.multi_reduction <add>, %17, %cst_10 [0] : vector<64x128xf32> to vector<128xf32>
    %19 = vector.shape_cast %18 : vector<128xf32> to vector<1x128xf32>
    %20 = vector.broadcast %19 : vector<1x128xf32> to vector<128x128xf32>
    %21 = arith.mulf %20, %1 : vector<128x128xf32>
    %cst_11 = arith.constant dense<0.000000e+00> : vector<128x128xf32>
    %22 = tpu.matmul %4, %17, %cst_11 {dimension_numbers = #tpu.dot_dimension_numbers<[1], [0], [0], [1], [0, 0, 1, 1], [], []>} : vector<128x64xf32>, vector<64x128xf32>, vector<128x128xf32> -> vector<128x128xf32>
    %23 = arith.subf %22, %21 : vector<128x128xf32>
    %24 = arith.mulf %23, %23 : vector<128x128xf32>
    %cst_12 = arith.constant dense<0.000000e+00> : vector<128xf32>
    %25 = vector.multi_reduction <add>, %24, %cst_12 [0] : vector<128x128xf32> to vector<128xf32>
    %26 = vector.shape_cast %25 : vector<128xf32> to vector<1x128xf32>
    %cst_13 = arith.constant 1.000000e-24 : f32
    %27 = vector.broadcast %cst_13 : f32 to vector<1x128xf32>
    %28 = arith.maximumf %26, %27 : vector<1x128xf32>
    %29 = math.rsqrt %28 : vector<1x128xf32>
    %30 = vector.broadcast %29 : vector<1x128xf32> to vector<128x128xf32>
    %31 = arith.mulf %23, %30 : vector<128x128xf32>
    %c0_14 = arith.constant 0 : index
    %c0_15 = arith.constant 0 : index
    %c0_16 = arith.constant 0 : index
    %32 = vector.load %arg5[%c0_14, %c0_15, %c0_16] : memref<2x128x128xf32, #tpu.memory_space<vmem>>, vector<1x128x128xf32>
    %33 = vector.shape_cast %32 : vector<1x128x128xf32> to vector<128x128xf32>
    %34 = vector.shape_cast %31 : vector<128x128xf32> to vector<1x128x128xf32>
    tpu.vector_store %arg5[%c0_14, %c0_15, %c0_16], %34 {strides = array<i32>} : memref<2x128x128xf32, #tpu.memory_space<vmem>>, vector<1x128x128xf32>,
    %c1 = arith.constant 1 : index
    %c0_17 = arith.constant 0 : index
    %c0_18 = arith.constant 0 : index
    %35 = vector.load %arg1[%c1, %c0_17, %c0_18] : memref<2x128x64xf32, #tpu.memory_space<vmem>>, vector<1x128x64xf32>
    %36 = vector.shape_cast %35 : vector<1x128x64xf32> to vector<128x64xf32>
    %cst_19 = arith.constant dense<0.000000e+00> : vector<64x128xf32>
    %37 = tpu.matmul %36, %0, %cst_19 {dimension_numbers = #tpu.dot_dimension_numbers<[0], [0], [1], [1], [0, 1, 1, 1], [], []>} : vector<128x64xf32>, vector<128x128xf32>, vector<64x128xf32> -> vector<64x128xf32>
    %38 = vector.broadcast %2 : vector<1x128xf32> to vector<64x128xf32>
    %39 = arith.addf %37, %38 : vector<64x128xf32>
    %cst_20 = arith.constant dense<0xFF800000> : vector<64xf32>
    %40 = vector.multi_reduction <maximumf>, %39, %cst_20 [1] : vector<64x128xf32> to vector<64xf32>
    %41 = vector.shape_cast %40 : vector<64xf32> to vector<64x1xf32>
    %42 = vector.broadcast %41 : vector<64x1xf32> to vector<64x128xf32>
    %43 = arith.subf %39, %42 : vector<64x128xf32>
    %44 = math.exp %43 : vector<64x128xf32>
    %cst_21 = arith.constant dense<0.000000e+00> : vector<64xf32>
    %45 = vector.multi_reduction <add>, %44, %cst_21 [1] : vector<64x128xf32> to vector<64xf32>
    %46 = vector.shape_cast %45 : vector<64xf32> to vector<64x1xf32>
    %47 = tpu.reciprocal %46 {approx = true} : vector<64x1xf32> -> vector<64x1xf32>
    %48 = vector.broadcast %47 : vector<64x1xf32> to vector<64x128xf32>
    %49 = arith.mulf %44, %48 : vector<64x128xf32>
    %cst_22 = arith.constant dense<0.000000e+00> : vector<128xf32>
    %50 = vector.multi_reduction <add>, %49, %cst_22 [0] : vector<64x128xf32> to vector<128xf32>
    %51 = vector.shape_cast %50 : vector<128xf32> to vector<1x128xf32>
    %52 = vector.broadcast %51 : vector<1x128xf32> to vector<128x128xf32>
    %53 = arith.mulf %52, %1 : vector<128x128xf32>
    %cst_23 = arith.constant dense<0.000000e+00> : vector<128x128xf32>
    %54 = tpu.matmul %36, %49, %cst_23 {dimension_numbers = #tpu.dot_dimension_numbers<[1], [0], [0], [1], [0, 0, 1, 1], [], []>} : vector<128x64xf32>, vector<64x128xf32>, vector<128x128xf32> -> vector<128x128xf32>
    %55 = arith.subf %54, %53 : vector<128x128xf32>
    %56 = arith.mulf %55, %55 : vector<128x128xf32>
    %cst_24 = arith.constant dense<0.000000e+00> : vector<128xf32>
    %57 = vector.multi_reduction <add>, %56, %cst_24 [0] : vector<128x128xf32> to vector<128xf32>
    %58 = vector.shape_cast %57 : vector<128xf32> to vector<1x128xf32>
    %cst_25 = arith.constant 1.000000e-24 : f32
    %59 = vector.broadcast %cst_25 : f32 to vector<1x128xf32>
    %60 = arith.maximumf %58, %59 : vector<1x128xf32>
    %61 = math.rsqrt %60 : vector<1x128xf32>
    %62 = vector.broadcast %61 : vector<1x128xf32> to vector<128x128xf32>
    %63 = arith.mulf %55, %62 : vector<128x128xf32>
    %c1_26 = arith.constant 1 : index
    %c0_27 = arith.constant 0 : index
    %c0_28 = arith.constant 0 : index
    %64 = vector.load %arg5[%c1_26, %c0_27, %c0_28] : memref<2x128x128xf32, #tpu.memory_space<vmem>>, vector<1x128x128xf32>
    %65 = vector.shape_cast %64 : vector<1x128x128xf32> to vector<128x128xf32>
    %66 = vector.shape_cast %63 : vector<128x128xf32> to vector<1x128x128xf32>
    tpu.vector_store %arg5[%c1_26, %c0_27, %c0_28], %66 {strides = array<i32>} : memref<2x128x128xf32, #tpu.memory_space<vmem>>, vector<1x128x128xf32>,
    return
  }
  func.func @transform_0(%arg0: i32) -> (i32, i32, i32) {
    %c0_i32 = arith.constant 0 : i32
    %c0_i32_0 = arith.constant 0 : i32
    %c0_i32_1 = arith.constant 0 : i32
    return %arg0, %c0_i32, %c0_i32_0 : i32, i32, i32
  }
  func.func @transform_1(%arg0: i32) -> (i32, i32) {
    %c0_i32 = arith.constant 0 : i32
    %c0_i32_0 = arith.constant 0 : i32
    %c0_i32_1 = arith.constant 0 : i32
    return %c0_i32, %c0_i32_0 : i32, i32
  }
  func.func @transform_2(%arg0: i32) -> (i32, i32) {
    %c0_i32 = arith.constant 0 : i32
    %c0_i32_0 = arith.constant 0 : i32
    %c0_i32_1 = arith.constant 0 : i32
    return %c0_i32, %c0_i32_0 : i32, i32
  }
  func.func @transform_3(%arg0: i32) -> (i32, i32) {
    %c0_i32 = arith.constant 0 : i32
    %c0_i32_0 = arith.constant 0 : i32
    %c0_i32_1 = arith.constant 0 : i32
    return %c0_i32, %c0_i32_0 : i32, i32
  }
  func.func @transform_4(%arg0: i32) -> (i32, i32, i32) {
    %c0_i32 = arith.constant 0 : i32
    %c0_i32_0 = arith.constant 0 : i32
    %c0_i32_1 = arith.constant 0 : i32
    return %arg0, %c0_i32, %c0_i32_0 : i32, i32, i32
  }
}

</mosaic_0001>

<bundles_post_ra>
// kernel: tpu_custom_call.1
= control target key start
LH: loop header
LB: loop body
LE: loop exit
PB: predicated region body
PF: predicated region fallthrough
CT: control target
= control target key end

     0   :  { %9 = vsyncpa [#allocation3], 0  ;;  %s2214_s0 = inlined_call_operand.vmem [shape: f32[4,128,64], index: 0, kind: input, shape index: {}]   ;;  %s2215_s1 = inlined_call_operand.vmem [shape: f32[128,128], index: 1, kind: input, shape index: {}]   ;;  %s2216_s2 = inlined_call_operand.vmem [shape: f32[128,128], index: 2, kind: input, shape index: {}]   ;;  %s2217_s3 = inlined_call_operand.vmem [shape: f32[1,128], index: 3, kind: input, shape index: {}]   ;;  %s2218_s4 = inlined_call_operand.hbm [shape: f32[4,128,128], index: 4, kind: output, shape index: {}]  }
   0x1   :  { %11 = vsyncpa [#allocation3 + $0x1], 0  ;;  %s1494_s15 = smov 0   ;;  %s1496_s16 = smov 0  }
   0x2   :  { %s1498_s17 = smov 0   ;;  %s1500_s18 = smov 0  }
   0x3 LB: > { %s1515_s19 = sadd.s32 4294967295, %s1465_s18   ;;  %s1118_s20 = sadd.s32 4294967294, %s1465_s18   ;;  %s1465_s18 = sphi %s1500_s18, %s2227_s18   ;;  %s1461_s17 = sphi %s1498_s17, %s2226_s17   ;;  %s1457_s16 = sphi %s1496_s16, %s2225_s16   ;;  %s1453_s15 = sphi %s1494_s15, %s2224_s15  }
   0x4   : > { %s1519_s21 = sadd.s32 1, %s1465_s18   ;;  %s113_s22 = sadd.s32 1, %s1461_s17 }
   0x5   : > { %s110_s23 = ssub.s32 %s1465_s18, %s1519_s21  ;;  %p123_p0 = scmp.ne.s32.totalorder %s1461_s17, %s1457_s16 }
   0x6   : > { %p111_p1 = scmp.eq.s32.totalorder %s110_s23, 0  ;;  %p124_p2 = scmp.eq.s32.totalorder %s1515_s19, 1 }
   0x7   : > { %p129_p3 = scmp.ne.s32.totalorder %s1457_s16, %s1453_s15  ;;  %p130_p4 = scmp.eq.s32.totalorder %s1118_s20, 1 }
   0x8   : > { %s1530_s24 = scalar_select %p111_p1, %s1461_s17, %s113_s22  }
   0x9   : > { %p1532_p5 = por %p124_p2, %p123_p0  ;;  %p1536_p6 = por %p130_p4, %p129_p3 }
   0xa   : > { %p1121_p7 = scmp.ge.s32.totalorder %s1465_s18, 1  ;;  %p167_p8 = scmp.lt.s32.totalorder %s1465_s18, 3 }
   0xc   : > { %p168_p9 = pnand %p1121_p7, %p167_p8 }
   0xe   : > { %171 = sbr.rel (%p168_p9) target bundleno = 959 (0x3bf), region = 36 }
  0x13   : > { %s1123_s27 = sshll.u32 %s1515_s19, 1  ;;  %v217_v36 = vld [vmem:[%s2215_s1 + $0x78] sm:$0xff]  ;;  %v216_v37 = vld [vmem:[%s2215_s1 + $0x70] sm:$0xff]  ;;  %v215_v40 = vld [vmem:[%s2215_s1 + $0x68] sm:$0xff]  ;;  %vm428_vm0 = vcmask 523264   ;;  %s1198_s8 = sshll.u32 %s1515_s19, 8 }
  0x14   : > { %p195_p10 = scmp.lt.s32.totalorder %s1123_s27, 3  ;;  %286 = vmatpush.msra.mxu0 %v217_v36  ;;  %687 = vmatpush.msra.mxu2 %v217_v36  ;;  %v214_v42 = vld [vmem:[%s2215_s1 + $0x60] sm:$0xff]  ;;  %v213_v43 = vld [vmem:[%s2215_s1 + $0x58] sm:$0xff]  ;;  %v212_v44 = vld [vmem:[%s2215_s1 + $0x50] sm:$0xff]  ;;  %s1052_s11 = scalar_lea.hbm %s2218_s4, %s1198_s8 }
  0x15   : > { %v211_v47 = vld [vmem:[%s2215_s1 + $0x48] sm:$0xff]  ;;  %v210_v49 = vld [vmem:[%s2215_s1 + $0x40] sm:$0xff]  ;;  %v209_v50 = vld [vmem:[%s2215_s1 + $0x38] sm:$0xff]  ;;  %s1055_s13 = sshll.u32 %s1052_s11, 4  ;;  %s1056_s13 = int_to_ptr.hbm [resolvable:$true] %s1055_s13 }
  0x16   : > { %s2229_s27 = smov (!%p195_p10, %s1123_s27), 3  ;;  %287 = vmatpush.msra.mxu0 %v216_v37  ;;  %688 = vmatpush.msra.mxu2 %v216_v37  ;;  %v208_v51 = vld [vmem:[%s2215_s1 + $0x30] sm:$0xff]  ;;  %v207_v54 = vld [vmem:[%s2215_s1 + $0x28] sm:$0xff]  ;;  %v206_v56 = vld [vmem:[%s2215_s1 + $0x20] sm:$0xff]  ;;  %s1417_s14 = sshra.s32 %s1056_s13, 4  ;;  %s1418_s14 = int_to_ptr.hbm [resolvable:$true] %s1417_s14 }
  0x17   : > { %s1196_s28 = sshll.u32 %s2229_s27, 7  ;;  %v205_v57 = vld [vmem:[%s2215_s1 + $0x18] sm:$0xff]  ;;  %v204_v58 = vld [vmem:[%s2215_s1 + $0x10] sm:$0xff]  ;;  %v203_v61 = vld [vmem:[%s2215_s1 + $0x8] sm:$0xff]  ;;  %s1419_s20 = scalar_lea.hbm %s1418_s14, 256 }
  0x18   : > { %s1546_s5 = scalar_lea.vmem %s2214_s0, %s1196_s28  ;;  %288 = vmatpush.msra.mxu0 %v215_v40  ;;  %689 = vmatpush.msra.mxu2 %v215_v40  ;;  %v202_v63 = vld [vmem:[%s2215_s1] sm:$0xff]  ;;  %p1420_p11 = scmp.ne.s32.totalorder %s1418_s14, %s1419_s20 }
  0x19   : > { %v1549_v0 = vld [vmem:[%s1546_s5] sm:$0xff]  ;;  %v1557_v3 = vld [vmem:[%s1546_s5 + $0x8] sm:$0xff]  ;;  %v1565_v6 = vld [vmem:[%s1546_s5 + $0x10] sm:$0xff]  ;;  %s1423_s27 = scalar_lea.hbm %s2218_s4, 512  ;;  %p1424_p0 = scmp.lt.s32.totalorder %s1418_s14, %s2218_s4 }
  0x1a   : > { %v1552_v1 = vld [vmem:[%s1546_s5 + $0x80] sm:$0xff]  ;;  %v1560_v4 = vld [vmem:[%s1546_s5 + $0x88] sm:$0xff]  ;;  %v1568_v7 = vld [vmem:[%s1546_s5 + $0x90] sm:$0xff]  ;;  %289 = vmatpush.msra.mxu0 %v214_v42  ;;  %690 = vmatpush.msra.mxu2 %v214_v42  ;;  %p1421_p12 = pnand %p1420_p11, %p1532_p5  ;;  %p1425_p1 = scmp.lt.s32.totalorder %s1423_s27, %s1419_s20 }
  0x1b   : > { %v1262_v2 = vpack.i.bf16 %v1549_v0, %v1552_v1  ;;  %v1264_v5 = vpack.i.bf16 %v1557_v3, %v1560_v4  ;;  %v1266_v8 = vpack.i.bf16 %v1565_v6, %v1568_v7  ;;  %v1573_v9 = vld [vmem:[%s1546_s5 + $0x18] sm:$0xff]  ;;  %v1581_v12 = vld [vmem:[%s1546_s5 + $0x20] sm:$0xff]  ;;  %v1589_v15 = vld [vmem:[%s1546_s5 + $0x28] sm:$0xff] }
  0x1c   : > { %v1576_v10 = vld [vmem:[%s1546_s5 + $0x98] sm:$0xff]  ;;  %v1584_v13 = vld [vmem:[%s1546_s5 + $0xa0] sm:$0xff]  ;;  %v1592_v16 = vld [vmem:[%s1546_s5 + $0xa8] sm:$0xff]  ;;  %290 = vmatpush.msra.mxu0 %v213_v43  ;;  %691 = vmatpush.msra.mxu2 %v213_v43  ;;  %p1422_p13 = pneg %p1421_p12  ;;  %p1426_p2 = por %p1425_p1, %p1424_p0 }
  0x1d   : > { %1263 = vxpose.xlu0.b32.start [1/16] (narrow) %v1262_v2, 64  ;;  %v1268_v11 = vpack.i.bf16 %v1573_v9, %v1576_v10  ;;  %v1270_v14 = vpack.i.bf16 %v1581_v12, %v1584_v13  ;;  %v1272_v17 = vpack.i.bf16 %v1589_v15, %v1592_v16  ;;  %v1597_v18 = vld [vmem:[%s1546_s5 + $0x30] sm:$0xff]  ;;  %v1605_v21 = vld [vmem:[%s1546_s5 + $0x38] sm:$0xff]  ;;  %v1613_v24 = vld [vmem:[%s1546_s5 + $0x40] sm:$0xff] }
  0x1e   : > { %v1600_v19 = vld [vmem:[%s1546_s5 + $0xb0] sm:$0xff]  ;;  %v1608_v22 = vld [vmem:[%s1546_s5 + $0xb8] sm:$0xff]  ;;  %v1616_v25 = vld [vmem:[%s1546_s5 + $0xc0] sm:$0xff]  ;;  %291 = vmatpush.msra.mxu0 %v212_v44  ;;  %692 = vmatpush.msra.mxu2 %v212_v44  ;;  %p1427_p3 = pnand %p1426_p2, %p1422_p13 }
  0x1f   : > { %v1274_v20 = vpack.i.bf16 %v1597_v18, %v1600_v19  ;;  %v1276_v23 = vpack.i.bf16 %v1605_v21, %v1608_v22  ;;  %v1278_v26 = vpack.i.bf16 %v1613_v24, %v1616_v25  ;;  %v1621_v27 = vld [vmem:[%s1546_s5 + $0x48] sm:$0xff]  ;;  %v1629_v30 = vld [vmem:[%s1546_s5 + $0x50] sm:$0xff]  ;;  %v1637_v33 = vld [vmem:[%s1546_s5 + $0x58] sm:$0xff] }
  0x20   : > { %v1624_v28 = vld [vmem:[%s1546_s5 + $0xc8] sm:$0xff]  ;;  %v1632_v31 = vld [vmem:[%s1546_s5 + $0xd0] sm:$0xff]  ;;  %v1640_v34 = vld [vmem:[%s1546_s5 + $0xd8] sm:$0xff]  ;;  %292 = vmatpush.msra.mxu0 %v211_v47  ;;  %693 = vmatpush.msra.mxu2 %v211_v47 }
  0x21   : > { %v1280_v29 = vpack.i.bf16 %v1621_v27, %v1624_v28  ;;  %v1282_v32 = vpack.i.bf16 %v1629_v30, %v1632_v31  ;;  %v1284_v35 = vpack.i.bf16 %v1637_v33, %v1640_v34  ;;  %v1651_v38 = vld [vmem:[%s1546_s5 + $0x60] sm:$0xff]  ;;  %v1671_v45 = vld [vmem:[%s1546_s5 + $0x68] sm:$0xff]  ;;  %v1691_v52 = vld [vmem:[%s1546_s5 + $0x70] sm:$0xff] }
  0x22   : > { %v1654_v39 = vld [vmem:[%s1546_s5 + $0xe0] sm:$0xff]  ;;  %v1674_v46 = vld [vmem:[%s1546_s5 + $0xe8] sm:$0xff]  ;;  %293 = vmatpush.msra.mxu0 %v210_v49  ;;  %694 = vmatpush.msra.mxu2 %v210_v49  ;;  %v1694_v53 = vld [vmem:[%s1546_s5 + $0xf0] sm:$0xff] }
  0x23   : > { %v1286_v41 = vpack.i.bf16 %v1651_v38, %v1654_v39  ;;  %v1288_v48 = vpack.i.bf16 %v1671_v45, %v1674_v46  ;;  %v1290_v55 = vpack.i.bf16 %v1691_v52, %v1694_v53  ;;  %v1711_v59 = vld [vmem:[%s1546_s5 + $0x78] sm:$0xff] }
  0x24   : > { %294 = vmatpush.msra.mxu0 %v209_v50  ;;  %695 = vmatpush.msra.mxu2 %v209_v50  ;;  %2222 = vst [vmem:[#allocation5_spill] sm:$0xff] %v1711_v59  ;;  %v1714_v60 = vld [vmem:[%s1546_s5 + $0xf8] sm:$0xff]  ;;  %s191_s5 = sand.u32 1, %s1457_s16  }
  0x25   : > { %1265 = vxpose.xlu0.b32.cont [2/16] (narrow) %v1264_v5, 64  ;;  %v1292_v62 = vpack.i.bf16 %v1711_v59, %v1714_v60  ;;  %s1122_s6 = sshll.u32 %s191_s5, 8  ;;  %s1040_s19 = scalar_lea.sflag [#allocation3], %s191_s5 }
  0x26   : > { %295 = vmatpush.msra.mxu0 %v208_v51  ;;  %696 = vmatpush.msra.mxu2 %v208_v51  ;;  %s2127_s7 = scalar_lea.vmem [#allocation2], %s1122_s6 }
  0x27   : > { %s1053_s12 = sshll.u32 %s2127_s7, 4  ;;  %s1054_s12 = int_to_ptr.vmem [resolvable:$true] %s1053_s12 }
  0x28   : > { %296 = vmatpush.msra.mxu0 %v207_v54  ;;  %697 = vmatpush.msra.mxu2 %v207_v54  ;;  %v1334_v54 = vld [vmem:[%s2217_s3] ss:$0 sm:$0xff] }
  0x2a   : > { %297 = vmatpush.msra.mxu0 %v206_v56  ;;  %698 = vmatpush.msra.mxu2 %v206_v56 }
  0x2c   : > { %298 = vmatpush.msra.mxu0 %v205_v57  ;;  %699 = vmatpush.msra.mxu2 %v205_v57 }
  0x2d   : > { %1267 = vxpose.xlu0.b32.cont [3/16] (narrow) %v1266_v8, 64 }
  0x2e   : > { %299 = vmatpush.msra.mxu0 %v204_v58  ;;  %700 = vmatpush.msra.mxu2 %v204_v58 }
  0x30   : > { %300 = vmatpush.msra.mxu0 %v203_v61  ;;  %701 = vmatpush.msra.mxu2 %v203_v61 }
  0x32   : > { %301 = vmatpush.msra.mxu0 %v202_v63  ;;  %702 = vmatpush.msra.mxu2 %v202_v63 }
  0x35   : > { %1269 = vxpose.xlu0.b32.cont [4/16] (narrow) %v1268_v11, 64 }
  0x3d   : > { %1271 = vxpose.xlu0.b32.cont [5/16] (narrow) %v1270_v14, 64 }
  0x45   : > { %1273 = vxpose.xlu0.b32.cont [6/16] (narrow) %v1272_v17, 64 }
  0x4d   : > { %1275 = vxpose.xlu0.b32.cont [7/16] (narrow) %v1274_v20, 64 }
  0x55   : > { %1277 = vxpose.xlu0.b32.cont [8/16] (narrow) %v1276_v23, 64 }
  0x5d   : > { %1279 = vxpose.xlu0.b32.cont [9/16] (narrow) %v1278_v26, 64 }
  0x65   : > { %1281 = vxpose.xlu0.b32.cont [10/16] (narrow) %v1280_v29, 64 }
  0x6d   : > { %1283 = vxpose.xlu0.b32.cont [11/16] (narrow) %v1282_v32, 64 }
  0x75   : > { %1285 = vxpose.xlu0.b32.cont [12/16] (narrow) %v1284_v35, 64 }
  0x7d   : > { %1287 = vxpose.xlu0.b32.cont [13/16] (narrow) %v1286_v41, 64 }
  0x85   : > { %1289 = vxpose.xlu0.b32.cont [14/16] (narrow) %v1288_v48, 64 }
  0x8d   : > { %1291 = vxpose.xlu0.b32.cont [15/16] (narrow) %v1290_v55, 64 }
  0x95   : > { %1293 = vxpose.xlu0.b32.end [16/16] (narrow) %v1292_v62, 64 }
  0xc1   : > { %v1294_v2 = vpop.trf.xlu0 }
  0xc2   : > { %v1298_v5 = vunpack.i.h.bf16 %v1294_v2  ;;  %v1295_v8 = vunpack.i.l.bf16 %v1294_v2 }
  0xc4   : > { %302 = vmatmul.f32.vlgmr.msra.gmra.mxu0 %v1298_v5  ;;  %703 = vmatmul.f32.vlgmr.msra.gmra.mxu2 %v1295_v8 }
  0xc9   : > { %v1299_v11 = vpop.trf.xlu0 }
  0xca   : > { %v1303_v14 = vunpack.i.h.bf16 %v1299_v11  ;;  %v1300_v17 = vunpack.i.l.bf16 %v1299_v11 }
  0xcc   : > { %305 = vmatmul.f32.gmra.mxu0 %v1303_v14  ;;  %706 = vmatmul.f32.gmra.mxu2 %v1300_v17 }
  0xd1   : > { %v1304_v20 = vpop.trf.xlu0 }
  0xd2   : > { %v1308_v23 = vunpack.i.h.bf16 %v1304_v20  ;;  %v1305_v26 = vunpack.i.l.bf16 %v1304_v20 }
  0xd4   : > { %308 = vmatmul.f32.gmra.mxu0 %v1308_v23  ;;  %709 = vmatmul.f32.gmra.mxu2 %v1305_v26 }
  0xd9   : > { %v1309_v29 = vpop.trf.xlu0 }
  0xda   : > { %v1313_v32 = vunpack.i.h.bf16 %v1309_v29  ;;  %v1310_v35 = vunpack.i.l.bf16 %v1309_v29 }
  0xdc   : > { %311 = vmatmul.f32.gmra.mxu0 %v1313_v32  ;;  %712 = vmatmul.f32.gmra.mxu2 %v1310_v35 }
  0xe1   : > { %v1314_v36 = vpop.trf.xlu0 }
  0xe2   : > { %v1318_v37 = vunpack.i.h.bf16 %v1314_v36  ;;  %v1315_v40 = vunpack.i.l.bf16 %v1314_v36 }
  0xe4   : > { %314 = vmatmul.f32.gmra.mxu0 %v1318_v37  ;;  %715 = vmatmul.f32.gmra.mxu2 %v1315_v40 }
  0xe9   : > { %v1319_v41 = vpop.trf.xlu0 }
  0xea   : > { %v1323_v42 = vunpack.i.h.bf16 %v1319_v41  ;;  %v1320_v43 = vunpack.i.l.bf16 %v1319_v41 }
  0xec   : > { %317 = vmatmul.f32.gmra.mxu0 %v1323_v42  ;;  %718 = vmatmul.f32.gmra.mxu2 %v1320_v43 }
  0xf1   : > { %v1324_v44 = vpop.trf.xlu0 }
  0xf2   : > { %v1325_v47 = vunpack.i.l.bf16 %v1324_v44  ;;  %v1328_v48 = vunpack.i.h.bf16 %v1324_v44 }
  0xf4   : > { %721 = vmatmul.f32.gmra.mxu2 %v1325_v47  ;;  %320 = vmatmul.f32.gmra.mxu0 %v1328_v48 }
  0xf9   : > { %v1329_v49 = vpop.trf.xlu0 }
  0xfa   : > { %v1330_v50 = vunpack.i.l.bf16 %v1329_v49  ;;  %v1333_v51 = vunpack.i.h.bf16 %v1329_v49 }
  0xfc   : > { %724 = vmatmul.f32.gmra.mxu2 %v1330_v50  ;;  %323 = vmatmul.f32.gmra.mxu0 %v1333_v51 }
 0x141   : > { %v303_v55 = vpop.f32.mrf.mxu0 }
 0x142   : > { %v1727_v56 = vadd.f32 %v1334_v54, %v303_v55 }
 0x147   : > { %v704_v57 = vpop.f32.mrf.mxu2 }
 0x148   : > { %v1729_v58 = vadd.f32 %v1334_v54, %v704_v57 }
 0x149   : > { %v306_v61 = vpop.f32.mrf.mxu0 }
 0x14a   : > { %728 = vmax.xlane.f32.xlu1 %v1729_v58  ;;  %v1744_v55 = vadd.f32 %v1334_v54, %v306_v61 }
 0x14f   : > { %v707_v62 = vpop.f32.mrf.mxu2 }
 0x150   : > { %v1732_v63 = vadd.f32 %v1334_v54, %v707_v62 }
 0x151   : > { %v309_v2 = vpop.f32.mrf.mxu0 }
 0x152   : > { %v1734_v5 = vadd.f32 %v1334_v54, %v309_v2  ;;  %730 = vmax.xlane.f32.xlu1 %v1732_v63 }
 0x154   : > { %331 = vmax.xlane.f32.xlu2 %v1734_v5 }
 0x157   : > { %v710_v8 = vpop.f32.mrf.mxu2 }
 0x158   : > { %v711_v11 = vadd.f32 %v1334_v54, %v710_v8 }
 0x159   : > { %v312_v14 = vpop.f32.mrf.mxu0 }
 0x15a   : > { %v1738_v17 = vadd.f32 %v1334_v54, %v312_v14  ;;  %732 = vmax.xlane.f32.xlu1 %v711_v11 }
 0x15c   : > { %333 = vmax.xlane.f32.xlu2 %v1738_v17 }
 0x15f   : > { %v713_v20 = vpop.f32.mrf.mxu2 }
 0x160   : > { %v714_v23 = vadd.f32 %v1334_v54, %v713_v20 }
 0x161   : > { %v315_v26 = vpop.f32.mrf.mxu0 }
 0x162   : > { %v316_v29 = vadd.f32 %v1334_v54, %v315_v26  ;;  %734 = vmax.xlane.f32.xlu1 %v714_v23 }
 0x164   : > { %335 = vmax.xlane.f32.xlu2 %v316_v29 }
 0x167   : > { %v716_v32 = vpop.f32.mrf.mxu2 }
 0x168   : > { %v717_v35 = vadd.f32 %v1334_v54, %v716_v32 }
 0x169   : > { %v318_v36 = vpop.f32.mrf.mxu0 }
 0x16a   : > { %v319_v37 = vadd.f32 %v1334_v54, %v318_v36  ;;  %736 = vmax.xlane.f32.xlu1 %v717_v35 }
 0x16c   : > { %337 = vmax.xlane.f32.xlu2 %v319_v37 }
 0x16f   : > { %v719_v40 = vpop.f32.mrf.mxu2 }
 0x170   : > { %v720_v41 = vadd.f32 %v1334_v54, %v719_v40 }
 0x171   : > { %v321_v42 = vpop.f32.mrf.mxu0 }
 0x172   : > { %v322_v47 = vadd.f32 %v1334_v54, %v321_v42 }
 0x174   : > { %738 = vmax.xlane.f32.xlu2 %v720_v41 }
 0x177   : > { %v722_v43 = vpop.f32.mrf.mxu2 }
 0x178   : > { %v723_v44 = vadd.f32 %v1334_v54, %v722_v43 }
 0x179   : > { %v324_v48 = vpop.f32.mrf.mxu0 }
 0x17a   : > { %740 = vmax.xlane.f32.xlu1 %v723_v44  ;;  %v1741_v51 = vadd.f32 %v1334_v54, %v324_v48 }
 0x17c   : > { %339 = vmax.xlane.f32.xlu2 %v322_v47 }
 0x17f   : > { %v725_v49 = vpop.f32.mrf.mxu2 }
 0x180   : > { %v726_v50 = vadd.f32 %v1334_v54, %v725_v49 }
 0x182   : > { %742 = vmax.xlane.f32.xlu1 %v726_v50 }
 0x184   : > { %341 = vmax.xlane.f32.xlu2 %v1741_v51 }
 0x18a   : > { %329 = vmax.xlane.f32.xlu1 %v1744_v55 }
 0x18c   : > { %327 = vmax.xlane.f32.xlu2 %v1727_v56 }
 0x1bd   : > { %v1748_v57 = vpop.xlane.xlu1 %728 }
 0x1c5   : > { %v731_v62 = vpop.xlane.xlu1 %730 }
 0x1c7   : > { %v1750_v2 = vpop.xlane.xlu2 %331 }
 0x1cd   : > { %v733_v8 = vpop.xlane.xlu1 %732 }
 0x1ce   : > { %v746_v14 = vsub.f32 %v711_v11, %v733_v8 }
 0x1cf   : > { %v1752_v20 = vpop.xlane.xlu2 %333 }
 0x1d0   : > { %v756_v26 = vmul.f32 1.442695, %v746_v14 }
 0x1d2   : > { %1335 = vpow2.f32 %v756_v26 }
 0x1d5   : > { %v735_v32 = vpop.xlane.xlu1 %734 }
 0x1d6   : > { %v747_v36 = vsub.f32 %v714_v23, %v735_v32 }
 0x1d7   : > { %v336_v40 = vpop.xlane.xlu2 %335 }
 0x1d8   : > { %v1754_v54 = vpop.eup %1335  ;;  %v758_v61 = vmul.f32 1.442695, %v747_v36  ;;  %v347_v42 = vsub.f32 %v316_v29, %v336_v40 }
 0x1d9   : > { %772 = vadd.xlane.f32.xlu1 %v1754_v54 }
 0x1da   : > { %1337 = vpow2.f32 %v758_v61  ;;  %v359_v43 = vmul.f32 1.442695, %v347_v42 }
 0x1dc   : > { %1339 = vpow2.f32 %v359_v43 }
 0x1dd   : > { %v737_v48 = vpop.xlane.xlu1 %736 }
 0x1de   : > { %v748_v49 = vsub.f32 %v717_v35, %v737_v48 }
 0x1df   : > { %v338_v59 = vpop.xlane.xlu2 %337 }
 0x1e0   : > { %v1757_v11 = vpop.eup %1337  ;;  %v760_v8 = vmul.f32 1.442695, %v748_v49  ;;  %v348_v14 = vsub.f32 %v319_v37, %v338_v59 }
 0x1e1   : > { %774 = vadd.xlane.f32.xlu1 %v1757_v11 }
 0x1e2   : > { %v1760_v23 = vpop.eup %1339  ;;  %1341 = vpow2.f32 %v760_v8  ;;  %v361_v26 = vmul.f32 1.442695, %v348_v14 }
 0x1e3   : > { %375 = vadd.xlane.f32.xlu2 %v1760_v23 }
 0x1e4   : > { %1343 = vpow2.f32 %v361_v26 }
 0x1e7   : > { %v739_v29 = vpop.xlane.xlu2 %738 }
 0x1e8   : > { %v1763_v32 = vpop.eup %1341  ;;  %v749_v36 = vsub.f32 %v720_v41, %v739_v29 }
 0x1e9   : > { %776 = vadd.xlane.f32.xlu1 %v1763_v32 }
 0x1ea   : > { %v1766_v35 = vpop.eup %1343  ;;  %v762_v40 = vmul.f32 1.442695, %v749_v36  ;;  %v745_v36 = vsub.f32 %v1732_v63, %v731_v62 }
 0x1eb   : > { %377 = vadd.xlane.f32.xlu2 %v1766_v35 }
 0x1ec   : > { %1345 = vpow2.f32 %v762_v40  ;;  %v754_v40 = vmul.f32 1.442695, %v745_v36 }
 0x1ed   : > { %v741_v59 = vpop.xlane.xlu1 %740 }
 0x1ee   : > { %v750_v48 = vsub.f32 %v723_v44, %v741_v59  ;;  %v346_v59 = vsub.f32 %v1738_v17, %v1752_v20 }
 0x1ef   : > { %v340_v37 = vpop.xlane.xlu2 %339 }
 0x1f0   : > { %v349_v61 = vsub.f32 %v322_v47, %v340_v37  ;;  %v764_v8 = vmul.f32 1.442695, %v750_v48  ;;  %v357_v48 = vmul.f32 1.442695, %v346_v59 }
 0x1f2   : > { %v1769_v42 = vpop.eup %1345  ;;  %v363_v43 = vmul.f32 1.442695, %v349_v61 }
 0x1f3   : > { %778 = vadd.xlane.f32.xlu1 %v1769_v42 }
 0x1f4   : > { %1347 = vpow2.f32 %v363_v43 }
 0x1f5   : > { %v743_v49 = vpop.xlane.xlu1 %742 }
 0x1f6   : > { %v751_v41 = vsub.f32 %v726_v50, %v743_v49  ;;  %v744_v50 = vsub.f32 %v1729_v58, %v1748_v57  ;;  %v345_v58 = vsub.f32 %v1734_v5, %v1750_v2 }
 0x1f7   : > { %v342_v26 = vpop.xlane.xlu2 %341 }
 0x1f8   : > { %v766_v14 = vmul.f32 1.442695, %v751_v41  ;;  %v350_v47 = vsub.f32 %v1741_v51, %v342_v26  ;;  %v752_v63 = vmul.f32 1.442695, %v744_v50  ;;  %v355_v20 = vmul.f32 1.442695, %v345_v58 }
 0x1fa   : > { %v1772_v29 = vpop.eup %1347  ;;  %1349 = vpow2.f32 %v766_v14  ;;  %v365_v61 = vmul.f32 1.442695, %v350_v47 }
 0x1fb   : > { %379 = vadd.xlane.f32.xlu2 %v1772_v29  ;;  %1351 = vpow2.f32 %v764_v8 }
 0x1fc   : > { %1353 = vpow2.f32 %v754_v40 }
 0x1fd   : > { %1355 = vpow2.f32 %v365_v61  ;;  %v330_v62 = vpop.xlane.xlu1 %329 }
 0x1fe   : > { %1357 = vpow2.f32 %v752_v63  ;;  %v344_v49 = vsub.f32 %v1744_v55, %v330_v62 }
 0x1ff   : > { %1359 = vpow2.f32 %v357_v48  ;;  %v328_v41 = vpop.xlane.xlu2 %327 }
 0x200   : > { %v1350_v37 = vpop.eup %1349  ;;  %v353_v17 = vmul.f32 1.442695, %v344_v49  ;;  %v343_v55 = vsub.f32 %v1727_v56, %v328_v41 }
 0x201   : > { %782 = vadd.xlane.f32.xlu1 %v1350_v37  ;;  %v1352_v44 = vpop.eup %1351 }
 0x202   : > { %v1781_v43 = vpop.eup %1353  ;;  %1361 = vpow2.f32 %v353_v17  ;;  %v351_v26 = vmul.f32 1.442695, %v343_v55 }
 0x203   : > { %780 = vadd.xlane.f32.xlu2 %v1352_v44  ;;  %v1784_v51 = vpop.eup %1355  ;;  %1363 = vpow2.f32 %v355_v20 }
 0x204   : > { %v1790_v57 = vpop.eup %1357  ;;  %1365 = vpow2.f32 %v351_v26 }
 0x205   : > { %v1793_v8 = vpop.eup %1359 }
 0x208   : > { %v1797_v14 = vpop.eup %1361 }
 0x209   : > { %770 = vadd.xlane.f32.xlu1 %v1781_v43  ;;  %v1800_v5 = vpop.eup %1363 }
 0x20a   : > { %v1803_v2 = vpop.eup %1365 }
 0x20b   : > { %381 = vadd.xlane.f32.xlu2 %v1784_v51 }
 0x211   : > { %768 = vadd.xlane.f32.xlu1 %v1790_v57 }
 0x213   : > { %373 = vadd.xlane.f32.xlu2 %v1793_v8 }
 0x219   : > { %369 = vadd.xlane.f32.xlu1 %v1797_v14 }
 0x21b   : > { %371 = vadd.xlane.f32.xlu2 %v1800_v5 }
 0x223   : > { %367 = vadd.xlane.f32.xlu2 %v1803_v2 }
 0x24c   : > { %v773_v36 = vpop.xlane.xlu1 %772 }
 0x254   : > { %v775_v47 = vpop.xlane.xlu1 %774 }
 0x256   : > { %v376_v40 = vpop.xlane.xlu2 %375 }
 0x25c   : > { %v777_v61 = vpop.xlane.xlu1 %776 }
 0x25e   : > { %v378_v50 = vpop.xlane.xlu2 %377 }
 0x266   : > { %v779_v56 = vpop.xlane.xlu1 %778 }
 0x26e   : > { %v380_v59 = vpop.xlane.xlu2 %379 }
 0x274   : > { %v783_v63 = vpop.xlane.xlu1 %782 }
 0x275   : > { %1367 = vrcp.f32 %v783_v63 }
 0x276   : > { %1369 = vrcp.f32 %v779_v56  ;;  %v781_v62 = vpop.xlane.xlu2 %780 }
 0x277   : > { %1371 = vrcp.f32 %v781_v62 }
 0x278   : > { %1373 = vrcp.f32 %v777_v61 }
 0x279   : > { %1375 = vrcp.f32 %v775_v47 }
 0x27a   : > { %1377 = vrcp.f32 %v773_v36 }
 0x27b   : > { %v1368_v48 = vpop.eup %1367  ;;  %1379 = vrcp.f32 %v380_v59 }
 0x27c   : > { %v1370_v49 = vpop.eup %1369  ;;  %v771_v58 = vpop.xlane.xlu1 %770  ;;  %v1806_v17 = vmul.f32 %v1368_v48, %v1350_v37 }
 0x27d   : > { %v1372_v20 = vpop.eup %1371  ;;  %v797_v37 = vmul.f32 %v1370_v49, %v1769_v42 }
 0x27e   : > { %v382_v41 = vpop.xlane.xlu2 %381  ;;  %885 = vmatpush.msrb.mxu2 %v1806_v17  ;;  %1207 = vmatpush.msra.mxu3 %v1806_v17  ;;  %v1810_v55 = vmul.f32 %v1372_v20, %v1352_v44  ;;  %v1374_v26 = vpop.eup %1373 }
 0x27f   : > { %1381 = vrcp.f32 %v382_v41  ;;  %v1376_v47 = vpop.eup %1375  ;;  %v796_v36 = vmul.f32 %v1374_v26, %v1763_v32 }
 0x280   : > { %1383 = vrcp.f32 %v771_v58  ;;  %886 = vmatpush.msrb.mxu2 %v1810_v55  ;;  %1208 = vmatpush.msra.mxu3 %v1810_v55  ;;  %v1378_v61 = vpop.eup %1377  ;;  %v795_v59 = vmul.f32 %v1376_v47, %v1757_v11 }
 0x281   : > { %1385 = vrcp.f32 %v378_v50  ;;  %v1380_v56 = vpop.eup %1379  ;;  %v794_v32 = vmul.f32 %v1378_v61, %v1754_v54 }
 0x282   : > { %887 = vmatpush.msrb.mxu2 %v797_v37  ;;  %1209 = vmatpush.msra.mxu3 %v797_v37  ;;  %1387 = vrcp.f32 %v376_v40  ;;  %v1824_v40 = vmul.f32 %v1380_v56, %v1772_v29 }
 0x284   : > { %888 = vmatpush.msrb.mxu2 %v796_v36  ;;  %1210 = vmatpush.msra.mxu3 %v796_v36  ;;  %v769_v44 = vpop.xlane.xlu1 %768 }
 0x285   : > { %v1382_v63 = vpop.eup %1381  ;;  %1389 = vrcp.f32 %v769_v44 }
 0x286   : > { %v1384_v62 = vpop.eup %1383  ;;  %v374_v48 = vpop.xlane.xlu2 %373  ;;  %889 = vmatpush.msrb.mxu2 %v795_v59  ;;  %1211 = vmatpush.msra.mxu3 %v795_v59  ;;  %v1818_v42 = vmul.f32 %v1382_v63, %v1784_v51 }
 0x287   : > { %v1386_v50 = vpop.eup %1385  ;;  %1391 = vrcp.f32 %v374_v48  ;;  %v793_v49 = vmul.f32 %v1384_v62, %v1781_v43 }
 0x288   : > { %485 = vmatpush.msrb.mxu0 %v1818_v42  ;;  %1199 = vmatpush.msra.mxu1 %v1818_v42  ;;  %v1388_v11 = vpop.eup %1387  ;;  %v396_v51 = vmul.f32 %v1386_v50, %v1766_v35 }
 0x289   : > { %890 = vmatpush.msrb.mxu2 %v794_v32  ;;  %1212 = vmatpush.msra.mxu3 %v794_v32  ;;  %v395_v29 = vmul.f32 %v1388_v11, %v1760_v23 }
 0x28a   : > { %486 = vmatpush.msrb.mxu0 %v1824_v40  ;;  %1200 = vmatpush.msra.mxu1 %v1824_v40 }
 0x28b   : > { %v1390_v58 = vpop.eup %1389  ;;  %891 = vmatpush.msrb.mxu2 %v793_v49  ;;  %1213 = vmatpush.msra.mxu3 %v793_v49 }
 0x28c   : > { %v792_v54 = vmul.f32 %v1390_v58, %v1790_v57  ;;  %487 = vmatpush.msrb.mxu0 %v396_v51  ;;  %1201 = vmatpush.msra.mxu1 %v396_v51  ;;  %v370_v41 = vpop.xlane.xlu1 %369 }
 0x28d   : > { %v1392_v20 = vpop.eup %1391 }
 0x28e   : > { %v800_v43 = vadd.f32 %v793_v49, %v792_v54  ;;  %488 = vmatpush.msrb.mxu0 %v395_v29  ;;  %1202 = vmatpush.msra.mxu1 %v395_v29  ;;  %v372_v26 = vpop.xlane.xlu2 %371  ;;  %v394_v47 = vmul.f32 %v1392_v20, %v1793_v8 }
 0x28f   : > { %1393 = vrcp.f32 %v372_v26  ;;  %892 = vmatpush.msrb.mxu2 %v792_v54  ;;  %1214 = vmatpush.msra.mxu3 %v792_v54  ;;  %v223_v54 = vld [vmem:[%s2216_s2 + $0x28] sm:$0xff] }
 0x290   : > { %v801_v35 = vadd.f32 %v800_v43, %v794_v32  ;;  %1395 = vrcp.f32 %v370_v41  ;;  %1158 = vmatmul.msk.f32.vlgmr.msrb.gmra.mxu2 %vm428_vm0, %v1552_v1  ;;  %1161 = vmatmul.msk.f32.vlgmr.msra.gmra.mxu3 %vm428_vm0, %v1576_v10  ;;  %v220_v32 = vld [vmem:[%s2216_s2 + $0x10] sm:$0xff] }
 0x291   : > { %489 = vmatpush.msrb.mxu0 %v394_v47  ;;  %1203 = vmatpush.msra.mxu1 %v394_v47 }
 0x292   : > { %v802_v23 = vadd.f32 %v801_v35, %v795_v59 }
 0x294   : > { %v803_v57 = vadd.f32 %v802_v23, %v796_v36  ;;  %v224_v23 = vld [vmem:[%s2216_s2 + $0x30] sm:$0xff] }
 0x295   : > { %v1394_v61 = vpop.eup %1393 }
 0x296   : > { %v1396_v56 = vpop.eup %1395  ;;  %v804_v44 = vadd.f32 %v803_v57, %v797_v37  ;;  %v368_v63 = vpop.xlane.xlu2 %367  ;;  %v393_v8 = vmul.f32 %v1394_v61, %v1800_v5 }
 0x297   : > { %1397 = vrcp.f32 %v368_v63  ;;  %v392_v1 = vmul.f32 %v1396_v56, %v1797_v14 }
 0x298   : > { %v805_v62 = vadd.f32 %v804_v44, %v1810_v55  ;;  %1159 = vmatmul.msk.f32.gmra.mxu2 %vm428_vm0, %v1560_v4  ;;  %1162 = vmatmul.msk.f32.gmra.mxu3 %vm428_vm0, %v1584_v13 }
 0x299   : > { %490 = vmatpush.msrb.mxu0 %v393_v8  ;;  %1204 = vmatpush.msra.mxu1 %v393_v8 }
 0x29a   : > { %v806_v10 = vadd.f32 %v805_v62, %v1806_v17 }
 0x29b   : > { %491 = vmatpush.msrb.mxu0 %v392_v1  ;;  %1205 = vmatpush.msra.mxu1 %v392_v1 }
 0x29d   : > { %v1398_v37 = vpop.eup %1397 }
 0x29e   : > { %v391_v5 = vmul.f32 %v1398_v37, %v1803_v2 }
 0x2a0   : > { %v399_v36 = vadd.f32 %v392_v1, %v391_v5  ;;  %1160 = vmatmul.msk.f32.gmra.mxu2 %vm428_vm0, %v1568_v7  ;;  %1163 = vmatmul.msk.f32.gmra.mxu3 %vm428_vm0, %v1592_v16 }
 0x2a1   : > { %492 = vmatpush.msrb.mxu0 %v391_v5  ;;  %1206 = vmatpush.msra.mxu1 %v391_v5 }
 0x2a2   : > { %v400_v4 = vadd.f32 %v399_v36, %v393_v8  ;;  %1126 = vmatmul.msk.f32.vlgmr.msrb.gmra.mxu0 %vm428_vm0, %v1549_v0  ;;  %1129 = vmatmul.msk.f32.vlgmr.msra.gmra.mxu1 %vm428_vm0, %v1573_v9  ;;  %v807_v0 = vrot.slane %v806_v10, 4  ;;  %v2223_v9 = vld [vmem:[#allocation5_spill] sm:$0xff] }
 0x2a4   : > { %v401_v13 = vadd.f32 %v400_v4, %v394_v47 }
 0x2a6   : > { %v402_v14 = vadd.f32 %v401_v13, %v395_v29 }
 0x2a8   : > { %v403_v17 = vadd.f32 %v402_v14, %v396_v51  ;;  %1164 = vmatmul.msk.f32.gmra.mxu3 %vm428_vm0, %v1600_v19 }
 0x2aa   : > { %v404_v7 = vadd.f32 %v403_v17, %v1824_v40  ;;  %1127 = vmatmul.msk.f32.gmra.mxu0 %vm428_vm0, %v1557_v3  ;;  %1130 = vmatmul.msk.f32.gmra.mxu1 %vm428_vm0, %v1581_v12  ;;  %v808_v3 = vadd.f32 %v807_v0, %v806_v10 }
 0x2ac   : > { %v405_v16 = vadd.f32 %v404_v7, %v1818_v42 }
 0x2b0   : > { %1165 = vmatmul.msk.f32.gmra.mxu3 %vm428_vm0, %v1608_v22 }
 0x2b2   : > { %1128 = vmatmul.msk.f32.gmra.mxu0 %vm428_vm0, %v1565_v6  ;;  %1131 = vmatmul.msk.f32.gmra.mxu1 %vm428_vm0, %v1589_v15  ;;  %v809_v6 = vrot.slane %v808_v3, 2  ;;  %v406_v15 = vrot.slane %v405_v16, 4 }
 0x2b4   : > { %v810_v12 = vadd.f32 %v809_v6, %v808_v3  ;;  %v407_v19 = vadd.f32 %v406_v15, %v405_v16  ;;  %v225_v15 = vld [vmem:[%s2216_s2 + $0x38] sm:$0xff] }
 0x2b6   : > { %v408_v22 = vrot.slane %v407_v19, 2 }
 0x2b8   : > { %1166 = vmatmul.msk.f32.gmra.mxu3 %vm428_vm0, %v1616_v25  ;;  %v409_v25 = vadd.f32 %v408_v22, %v407_v19 }
 0x2ba   : > { %1132 = vmatmul.msk.f32.gmra.mxu1 %vm428_vm0, %v1597_v18  ;;  %v811_v18 = vrot.slane %v810_v12, 1 }
 0x2c0   : > { %1167 = vmatmul.msk.f32.gmra.mxu3 %vm428_vm0, %v1624_v28 }
 0x2c2   : > { %1133 = vmatmul.msk.f32.gmra.mxu1 %vm428_vm0, %v1605_v21  ;;  %v1904_v21 = vadd.f32 %v811_v18, %v810_v12 }
 0x2c4   : > { %v815_v51 = vmul.f32 %v1904_v21, %v220_v32  ;;  %v818_v47 = vmul.f32 %v1904_v21, %v223_v54  ;;  %v819_v1 = vmul.f32 %v1904_v21, %v224_v23 }
 0x2c8   : > { %1168 = vmatmul.msk.f32.gmra.mxu3 %vm428_vm0, %v1632_v31 }
 0x2ca   : > { %1134 = vmatmul.msk.f32.gmra.mxu1 %vm428_vm0, %v1613_v24  ;;  %v221_v24 = vld [vmem:[%s2216_s2 + $0x18] sm:$0xff] }
 0x2d0   : > { %1169 = vmatmul.msk.f32.gmra.mxu3 %vm428_vm0, %v1640_v34  ;;  %v222_v34 = vld [vmem:[%s2216_s2 + $0x20] sm:$0xff] }
 0x2d2   : > { %1135 = vmatmul.msk.f32.gmra.mxu1 %vm428_vm0, %v1621_v27  ;;  %v816_v27 = vmul.f32 %v1904_v21, %v221_v24 }
 0x2d8   : > { %1170 = vmatmul.msk.f32.gmra.mxu3 %vm428_vm0, %v1654_v39 }
 0x2da   : > { %1136 = vmatmul.msk.f32.gmra.mxu1 %vm428_vm0, %v1629_v30 }
 0x2e0   : > { %1171 = vmatmul.msk.f32.gmra.mxu3 %vm428_vm0, %v1674_v46  ;;  %v218_v46 = vld [vmem:[%s2216_s2] sm:$0xff] }
 0x2e1   : > { %v813_v55 = vmul.f32 %v1904_v21, %v218_v46 }
 0x2e2   : > { %1137 = vmatmul.msk.f32.gmra.mxu1 %vm428_vm0, %v1637_v33  ;;  %v410_v33 = vrot.slane %v409_v25, 1 }
 0x2e4   : > { %v1918_v39 = vadd.f32 %v410_v33, %v409_v25 }
 0x2e6   : > { %v415_v48 = vmul.f32 %v1918_v39, %v221_v24  ;;  %v416_v35 = vmul.f32 %v1918_v39, %v222_v34  ;;  %v412_v37 = vmul.f32 %v1918_v39, %v218_v46  ;;  %v414_v6 = vmul.f32 %v1918_v39, %v220_v32 }
 0x2e8   : > { %1172 = vmatmul.msk.f32.gmra.mxu3 %vm428_vm0, %v1694_v53 }
 0x2ea   : > { %1138 = vmatmul.msk.f32.gmra.mxu1 %vm428_vm0, %v1651_v38  ;;  %v219_v38 = vld [vmem:[%s2216_s2 + $0x8] sm:$0xff] }
 0x2eb   : > { %v413_v57 = vmul.f32 %v1918_v39, %v219_v38 }
 0x2f0   : > { %1173 = vmatmul.msk.f32.gmra.mxu3 %vm428_vm0, %v1714_v60  ;;  %v814_v60 = vmul.f32 %v1904_v21, %v219_v38 }
 0x2f2   : > { %1139 = vmatmul.msk.f32.gmra.mxu1 %vm428_vm0, %v1671_v45  ;;  %v817_v45 = vmul.f32 %v1904_v21, %v222_v34 }
 0x2fa   : > { %1140 = vmatmul.msk.f32.gmra.mxu1 %vm428_vm0, %v1691_v52 }
 0x302   : > { %1141 = vmatmul.msk.f32.gmra.mxu1 %vm428_vm0, %v2223_v9 }
 0x313   : > { %v894_v28 = vpop.f32.mrf.mxu2  ;;  %v903_v30 = vpop.f32.mrf.mxu3 }
 0x314   : > { %v1910_v31 = vsub.f32 %v903_v30, %v816_v27  ;;  %v1934_v40 = vsub.f32 %v894_v28, %v813_v55  ;;  %v417_v27 = vmul.f32 %v1918_v39, %v223_v54  ;;  %v820_v28 = vmul.f32 %v1904_v21, %v225_v15 }
 0x316   : > { %v958_v20 = vmul.f32 %v1934_v40, %v1934_v40  ;;  %v961_v44 = vmul.f32 %v1910_v31, %v1910_v31 }
 0x31b   : > { %v897_v52 = vpop.f32.mrf.mxu2  ;;  %v906_v53 = vpop.f32.mrf.mxu3 }
 0x31c   : > { %v1925_v2 = vsub.f32 %v906_v53, %v817_v45  ;;  %v1928_v59 = vsub.f32 %v897_v52, %v814_v60  ;;  %v418_v60 = vmul.f32 %v1918_v39, %v224_v23  ;;  %v227_v23 = vld [vmem:[%s2216_s2 + $0x48] sm:$0xff] }
 0x31e   : > { %v959_v49 = vmul.f32 %v1928_v59, %v1928_v59  ;;  %v962_v10 = vmul.f32 %v1925_v2, %v1925_v2 }
 0x31f   : > { %v494_v42 = vpop.f32.mrf.mxu0  ;;  %v503_v50 = vpop.f32.mrf.mxu1 }
 0x320   : > { %v1936_v11 = vsub.f32 %v503_v50, %v415_v48  ;;  %v974_v43 = vadd.f32 %v959_v49, %v958_v20  ;;  %v1968_v13 = vsub.f32 %v494_v42, %v412_v37  ;;  %v226_v48 = vld [vmem:[%s2216_s2 + $0x40] sm:$0xff] }
 0x321   : > { %v821_v54 = vmul.f32 %v1904_v21, %v226_v48 }
 0x322   : > { %v558_v18 = vmul.f32 %v1968_v13, %v1968_v13  ;;  %v561_v33 = vmul.f32 %v1936_v11, %v1936_v11 }
 0x323   : > { %v900_v58 = vpop.f32.mrf.mxu2  ;;  %v909_v29 = vpop.f32.mrf.mxu3 }
 0x324   : > { %v1946_v41 = vsub.f32 %v900_v58, %v815_v51  ;;  %v1958_v8 = vsub.f32 %v909_v29, %v818_v47  ;;  %v419_v47 = vmul.f32 %v1918_v39, %v225_v15 }
 0x326   : > { %v960_v26 = vmul.f32 %v1946_v41, %v1946_v41  ;;  %v963_v14 = vmul.f32 %v1958_v8, %v1958_v8 }
 0x327   : > { %v497_v61 = vpop.f32.mrf.mxu0  ;;  %v506_v56 = vpop.f32.mrf.mxu1 }
 0x328   : > { %v975_v63 = vadd.f32 %v974_v43, %v960_v26  ;;  %v1960_v62 = vsub.f32 %v506_v56, %v416_v35  ;;  %v1966_v36 = vsub.f32 %v497_v61, %v413_v57 }
 0x32a   : > { %v976_v5 = vadd.f32 %v975_v63, %v961_v44  ;;  %v559_v0 = vmul.f32 %v1966_v36, %v1966_v36  ;;  %v562_v46 = vmul.f32 %v1960_v62, %v1960_v62  ;;  %v822_v44 = vmul.f32 %v1904_v21, %v227_v23 }
 0x32b   : > { %v912_v4 = vpop.f32.mrf.mxu3 }
 0x32c   : > { %v977_v17 = vadd.f32 %v976_v5, %v962_v10  ;;  %v1972_v7 = vsub.f32 %v912_v4, %v819_v1  ;;  %v574_v24 = vadd.f32 %v559_v0, %v558_v18  ;;  %v420_v5 = vmul.f32 %v1918_v39, %v226_v48 }
 0x32d   : > { %v421_v18 = vmul.f32 %v1918_v39, %v227_v23 }
 0x32e   : > { %v978_v16 = vadd.f32 %v977_v17, %v963_v14  ;;  %v964_v3 = vmul.f32 %v1972_v7, %v1972_v7  ;;  %v228_v14 = vld [vmem:[%s2216_s2 + $0x50] sm:$0xff] }
 0x32f   : > { %v500_v9 = vpop.f32.mrf.mxu0  ;;  %v509_v12 = vpop.f32.mrf.mxu1 }
 0x330   : > { %v979_v19 = vadd.f32 %v978_v16, %v964_v3  ;;  %v1984_v22 = vsub.f32 %v500_v9, %v414_v6  ;;  %v1992_v38 = vsub.f32 %v509_v12, %v417_v27  ;;  %v823_v3 = vmul.f32 %v1904_v21, %v228_v14 }
 0x332   : > { %v560_v25 = vmul.f32 %v1984_v22, %v1984_v22  ;;  %v563_v42 = vmul.f32 %v1992_v38, %v1992_v38 }
 0x333   : > { %v915_v30 = vpop.f32.mrf.mxu3 }
 0x334   : > { %v575_v34 = vadd.f32 %v574_v24, %v560_v25  ;;  %v1994_v45 = vsub.f32 %v915_v30, %v820_v28  ;;  %v229_v24 = vld [vmem:[%s2216_s2 + $0x58] sm:$0xff] }
 0x335   : > { %v824_v30 = vmul.f32 %v1904_v21, %v229_v24 }
 0x336   : > { %v576_v52 = vadd.f32 %v575_v34, %v561_v33  ;;  %v965_v53 = vmul.f32 %v1994_v45, %v1994_v45 }
 0x337   : > { %v512_v55 = vpop.f32.mrf.mxu1 }
 0x338   : > { %v577_v50 = vadd.f32 %v576_v52, %v562_v46  ;;  %v980_v32 = vadd.f32 %v979_v19, %v965_v53  ;;  %v2006_v49 = vsub.f32 %v512_v55, %v418_v60  ;;  %v422_v53 = vmul.f32 %v1918_v39, %v228_v14  ;;  %v230_v55 = vld [vmem:[%s2216_s2 + $0x60] sm:$0xff]  ;;  %v232_v14 = vld [vmem:[%s2216_s2 + $0x70] sm:$0xff] }
 0x33a   : > { %v578_v51 = vadd.f32 %v577_v50, %v563_v42  ;;  %v564_v58 = vmul.f32 %v2006_v49, %v2006_v49 }
 0x33b   : > { %v918_v29 = vpop.f32.mrf.mxu3 }
 0x33c   : > { %v579_v20 = vadd.f32 %v578_v51, %v564_v58  ;;  %v2011_v43 = vsub.f32 %v918_v29, %v821_v54 }
 0x33e   : > { %v966_v26 = vmul.f32 %v2011_v43, %v2011_v43 }
 0x33f   : > { %v515_v35 = vpop.f32.mrf.mxu1 }
 0x340   : > { %v981_v57 = vadd.f32 %v980_v32, %v966_v26  ;;  %v2019_v61 = vsub.f32 %v515_v35, %v419_v47  ;;  %v825_v32 = vmul.f32 %v1904_v21, %v230_v55  ;;  %v231_v47 = vld [vmem:[%s2216_s2 + $0x68] sm:$0xff] }
 0x342   : > { %v565_v56 = vmul.f32 %v2019_v61, %v2019_v61 }
 0x343   : > { %v921_v63 = vpop.f32.mrf.mxu3 }
 0x344   : > { %v580_v1 = vadd.f32 %v579_v20, %v565_v56  ;;  %v2024_v10 = vsub.f32 %v921_v63, %v822_v44  ;;  %v423_v20 = vmul.f32 %v1918_v39, %v229_v24  ;;  %v826_v56 = vmul.f32 %v1904_v21, %v231_v47 }
 0x345   : > { %v425_v24 = vmul.f32 %v1918_v39, %v231_v47 }
 0x346   : > { %v967_v37 = vmul.f32 %v2024_v10, %v2024_v10 }
 0x347   : > { %v518_v4 = vpop.f32.mrf.mxu1 }
 0x348   : > { %v982_v17 = vadd.f32 %v981_v57, %v967_v37  ;;  %v2032_v16 = vsub.f32 %v518_v4, %v420_v5  ;;  %v424_v5 = vmul.f32 %v1918_v39, %v230_v55 }
 0x34a   : > { %v566_v0 = vmul.f32 %v2032_v16, %v2032_v16 }
 0x34b   : > { %v924_v6 = vpop.f32.mrf.mxu3 }
 0x34c   : > { %v581_v9 = vadd.f32 %v580_v1, %v566_v0  ;;  %v2037_v12 = vsub.f32 %v924_v6, %v823_v3  ;;  %v827_v6 = vmul.f32 %v1904_v21, %v232_v14 }
 0x34e   : > { %v968_v15 = vmul.f32 %v2037_v12, %v2037_v12 }
 0x34f   : > { %v521_v19 = vpop.f32.mrf.mxu1 }
 0x350   : > { %v983_v25 = vadd.f32 %v982_v17, %v968_v15  ;;  %v2045_v27 = vsub.f32 %v521_v19, %v421_v18 }
 0x352   : > { %v567_v28 = vmul.f32 %v2045_v27, %v2045_v27 }
 0x353   : > { %v927_v33 = vpop.f32.mrf.mxu3 }
 0x354   : > { %v582_v34 = vadd.f32 %v581_v9, %v567_v28  ;;  %v2050_v46 = vsub.f32 %v927_v33, %v824_v30  ;;  %v233_v28 = vld [vmem:[%s2216_s2 + $0x78] sm:$0xff] }
 0x356   : > { %v969_v52 = vmul.f32 %v2050_v46, %v2050_v46 }
 0x357   : > { %v524_v60 = vpop.f32.mrf.mxu1 }
 0x358   : > { %v984_v48 = vadd.f32 %v983_v25, %v969_v52  ;;  %v2058_v42 = vsub.f32 %v524_v60, %v422_v53  ;;  %v828_v52 = vmul.f32 %v1904_v21, %v233_v28 }
 0x35a   : > { %v568_v50 = vmul.f32 %v2058_v42, %v2058_v42 }
 0x35b   : > { %v930_v51 = vpop.f32.mrf.mxu3 }
 0x35c   : > { %v583_v58 = vadd.f32 %v582_v34, %v568_v50  ;;  %v2063_v54 = vsub.f32 %v930_v51, %v825_v32  ;;  %v426_v50 = vmul.f32 %v1918_v39, %v232_v14 }
 0x35e   : > { %v970_v29 = vmul.f32 %v2063_v54, %v2063_v54 }
 0x35f   : > { %v527_v26 = vpop.f32.mrf.mxu1 }
 0x360   : > { %v985_v35 = vadd.f32 %v984_v48, %v970_v29  ;;  %v2071_v23 = vsub.f32 %v527_v26, %v423_v20 }
 0x362   : > { %v569_v57 = vmul.f32 %v2071_v23, %v2071_v23 }
 0x363   : > { %v933_v44 = vpop.f32.mrf.mxu3 }
 0x364   : > { %v584_v63 = vadd.f32 %v583_v58, %v569_v57  ;;  %v2076_v1 = vsub.f32 %v933_v44, %v826_v56  ;;  %v427_v57 = vmul.f32 %v1918_v39, %v233_v28 }
 0x366   : > { %v971_v37 = vmul.f32 %v2076_v1, %v2076_v1 }
 0x367   : > { %v530_v4 = vpop.f32.mrf.mxu1 }
 0x368   : > { %v986_v17 = vadd.f32 %v985_v35, %v971_v37  ;;  %v2084_v0 = vsub.f32 %v530_v4, %v424_v5 }
 0x36a   : > { %v570_v3 = vmul.f32 %v2084_v0, %v2084_v0 }
 0x36b   : > { %v936_v9 = vpop.f32.mrf.mxu3 }
 0x36c   : > { %v585_v15 = vadd.f32 %v584_v63, %v570_v3  ;;  %v2089_v18 = vsub.f32 %v936_v9, %v827_v6 }
 0x36e   : > { %v972_v19 = vmul.f32 %v2089_v18, %v2089_v18 }
 0x36f   : > { %v533_v25 = vpop.f32.mrf.mxu1 }
 0x370   : > { %v987_v30 = vadd.f32 %v986_v17, %v972_v19  ;;  %v2097_v33 = vsub.f32 %v533_v25, %v425_v24 }
 0x372   : > { %v571_v34 = vmul.f32 %v2097_v33, %v2097_v33 }
 0x373   : > { %v939_v53 = vpop.f32.mrf.mxu3 }
 0x374   : > { %v586_v60 = vadd.f32 %v585_v15, %v571_v34  ;;  %v957_v55 = vsub.f32 %v939_v53, %v828_v52 }
 0x376   : > { %v973_v48 = vmul.f32 %v957_v55, %v957_v55 }
 0x377   : > { %v536_v32 = vpop.f32.mrf.mxu1 }
 0x378   : > { %v988_v51 = vadd.f32 %v987_v30, %v973_v48  ;;  %v2103_v58 = vsub.f32 %v536_v32, %v426_v50 }
 0x37a   : > { %v989_v29 = vrot.slane %v988_v51, 4  ;;  %v572_v20 = vmul.f32 %v2103_v58, %v2103_v58 }
 0x37c   : > { %v990_v26 = vadd.f32 %v989_v29, %v988_v51  ;;  %v587_v47 = vadd.f32 %v586_v60, %v572_v20 }
 0x37e   : > { %v991_v35 = vrot.slane %v990_v26, 2 }
 0x37f   : > { %v539_v21 = vpop.f32.mrf.mxu1 }
 0x380   : > { %v992_v56 = vadd.f32 %v991_v35, %v990_v26  ;;  %v2108_v44 = vsub.f32 %v539_v21, %v427_v57 }
 0x382   : > { %v993_v63 = vrot.slane %v992_v56, 1  ;;  %v573_v37 = vmul.f32 %v2108_v44, %v2108_v44 }
 0x384   : > { %v994_v5 = vadd.f32 %v993_v63, %v992_v56  ;;  %v588_v4 = vadd.f32 %v587_v47, %v573_v37 }
 0x386   : > { %v995_v14 = vmax.f32 %v994_v5, 1e-24  ;;  %v589_v17 = vrot.slane %v588_v4, 4 }
 0x388   : > { %1399 = vrsqrt.f32 %v995_v14  ;;  %v590_v3 = vadd.f32 %v589_v17, %v588_v4  ;;  %vm1002_vm2 = vweird.f32 %v995_v14 }
 0x38a   : > { %v591_v6 = vrot.slane %v590_v3, 2 }
 0x38c   : > { %v592_v9 = vadd.f32 %v591_v6, %v590_v3 }
 0x38e   : > { %v1400_v15 = vpop.eup %1399  ;;  %v593_v39 = vrot.slane %v592_v9, 1 }
 0x38f   : > { %v997_v19 = vmul.f32 %v1400_v15, %v995_v14  ;;  %vm1003_vm1 = vweird.f32 %v1400_v15 }
 0x390   : > { %v594_v24 = vadd.f32 %v593_v39, %v592_v9  ;;  %vm1004_vm3 = vmor %vm1002_vm2, %vm1003_vm1 }
 0x391   : > { %v998_v25 = vmul.f32 %v1400_v15, %v997_v19 }
 0x392   : > { %v595_v28 = vmax.f32 %v594_v24, 1e-24 }
 0x393   : > { %v999_v30 = vmul.f32 0.5, %v998_v25 }
 0x394   : > { %1401 = vrsqrt.f32 %v595_v28  ;;  %vm602_vm5 = vweird.f32 %v595_v28 }
 0x395   : > { %v1000_v34 = vsub.f32 1.5, %v999_v30 }
 0x397   : > { %v1001_v52 = vmul.f32 %v1400_v15, %v1000_v34 }
 0x399   : > { %v1005_v53 = vsel %vm1004_vm3, %v1400_v15, %v1001_v52 }
 0x39a   : > { %v1006_v60 = vmul.f32 %v1005_v53, %v1934_v40  ;;  %v1007_v48 = vmul.f32 %v1005_v53, %v1928_v59  ;;  %v1008_v50 = vmul.f32 %v1005_v53, %v1946_v41  ;;  %v1009_v32 = vmul.f32 %v1005_v53, %v1910_v31  ;;  %v1402_v51 = vpop.eup %1401 }
 0x39b   : > { %v1010_v29 = vmul.f32 %v1005_v53, %v1925_v2  ;;  %v1011_v20 = vmul.f32 %v1005_v53, %v1958_v8  ;;  %v1012_v26 = vmul.f32 %v1005_v53, %v1972_v7  ;;  %v1013_v47 = vmul.f32 %v1005_v53, %v1994_v45 }
 0x39c   : > { %v1014_v35 = vmul.f32 %v1005_v53, %v2011_v43  ;;  %v1015_v57 = vmul.f32 %v1005_v53, %v2024_v10  ;;  %v1016_v40 = vmul.f32 %v1005_v53, %v2037_v12  ;;  %v1017_v59 = vmul.f32 %v1005_v53, %v2050_v46  ;;  %1174 = vst [vmem:[%s2127_s7 + $0x80] sm:$0xff] %v1006_v60 }
 0x39d   : > { %v1018_v31 = vmul.f32 %v1005_v53, %v2063_v54  ;;  %v1019_v2 = vmul.f32 %v1005_v53, %v2076_v1  ;;  %v1020_v41 = vmul.f32 %v1005_v53, %v2089_v18  ;;  %v1021_v8 = vmul.f32 %v1005_v53, %v957_v55  ;;  %1175 = vst [vmem:[%s2127_s7 + $0x88] sm:$0xff] %v1007_v48 }
 0x39e   : > { %1176 = vst [vmem:[%s2127_s7 + $0x90] sm:$0xff] %v1008_v50  ;;  %v597_v7 = vmul.f32 %v1402_v51, %v595_v28  ;;  %vm603_vm4 = vweird.f32 %v1402_v51 }
 0x39f   : > { %1177 = vst [vmem:[%s2127_s7 + $0x98] sm:$0xff] %v1009_v32  ;;  %vm604_vm6 = vmor %vm602_vm5, %vm603_vm4 }
 0x3a0   : > { %1178 = vst [vmem:[%s2127_s7 + $0xa0] sm:$0xff] %v1010_v29  ;;  %v598_v45 = vmul.f32 %v1402_v51, %v597_v7 }
 0x3a1   : > { %1179 = vst [vmem:[%s2127_s7 + $0xa8] sm:$0xff] %v1011_v20 }
 0x3a2   : > { %1180 = vst [vmem:[%s2127_s7 + $0xb0] sm:$0xff] %v1012_v26  ;;  %v599_v43 = vmul.f32 0.5, %v598_v45 }
 0x3a3   : > { %1181 = vst [vmem:[%s2127_s7 + $0xb8] sm:$0xff] %v1013_v47 }
 0x3a4   : > { %1182 = vst [vmem:[%s2127_s7 + $0xc0] sm:$0xff] %v1014_v35  ;;  %v600_v10 = vsub.f32 1.5, %v599_v43 }
 0x3a5   : > { %1183 = vst [vmem:[%s2127_s7 + $0xc8] sm:$0xff] %v1015_v57 }
 0x3a6   : > { %1184 = vst [vmem:[%s2127_s7 + $0xd0] sm:$0xff] %v1016_v40  ;;  %v601_v12 = vmul.f32 %v1402_v51, %v600_v10 }
 0x3a7   : > { %1185 = vst [vmem:[%s2127_s7 + $0xd8] sm:$0xff] %v1017_v59 }
 0x3a8   : > { %1186 = vst [vmem:[%s2127_s7 + $0xe0] sm:$0xff] %v1018_v31  ;;  %v605_v46 = vsel %vm604_vm6, %v1402_v51, %v601_v12 }
 0x3a9   : > { %1187 = vst [vmem:[%s2127_s7 + $0xe8] sm:$0xff] %v1019_v2  ;;  %v606_v54 = vmul.f32 %v605_v46, %v1968_v13  ;;  %v607_v1 = vmul.f32 %v605_v46, %v1966_v36  ;;  %v608_v18 = vmul.f32 %v605_v46, %v1984_v22  ;;  %v609_v55 = vmul.f32 %v605_v46, %v1936_v11 }
 0x3aa   : > { %1188 = vst [vmem:[%s2127_s7 + $0xf0] sm:$0xff] %v1020_v41  ;;  %v610_v21 = vmul.f32 %v605_v46, %v1960_v62  ;;  %v611_v56 = vmul.f32 %v605_v46, %v1992_v38  ;;  %v612_v63 = vmul.f32 %v605_v46, %v2006_v49  ;;  %v613_v13 = vmul.f32 %v605_v46, %v2019_v61 }
 0x3ab   : > { %1189 = vst [vmem:[%s2127_s7 + $0xf8] sm:$0xff] %v1021_v8  ;;  %v614_v36 = vmul.f32 %v605_v46, %v2032_v16  ;;  %v615_v11 = vmul.f32 %v605_v46, %v2045_v27  ;;  %v616_v22 = vmul.f32 %v605_v46, %v2058_v42  ;;  %v617_v62 = vmul.f32 %v605_v46, %v2071_v23 }
 0x3ac   : > { %v618_v38 = vmul.f32 %v605_v46, %v2084_v0  ;;  %v619_v49 = vmul.f32 %v605_v46, %v2097_v33  ;;  %v620_v61 = vmul.f32 %v605_v46, %v2103_v58  ;;  %v621_v37 = vmul.f32 %v605_v46, %v2108_v44  ;;  %622 = vst [vmem:[%s2127_s7] sm:$0xff] %v606_v54 }
 0x3ad   : > { %623 = vst [vmem:[%s2127_s7 + $0x8] sm:$0xff] %v607_v1 }
 0x3ae   : > { %624 = vst [vmem:[%s2127_s7 + $0x10] sm:$0xff] %v608_v18 }
 0x3af   : > { %625 = vst [vmem:[%s2127_s7 + $0x18] sm:$0xff] %v609_v55 }
 0x3b0   : > { %626 = vst [vmem:[%s2127_s7 + $0x20] sm:$0xff] %v610_v21 }
 0x3b1   : > { %627 = vst [vmem:[%s2127_s7 + $0x28] sm:$0xff] %v611_v56 }
 0x3b2   : > { %628 = vst [vmem:[%s2127_s7 + $0x30] sm:$0xff] %v612_v63 }
 0x3b3   : > { %629 = vst [vmem:[%s2127_s7 + $0x38] sm:$0xff] %v613_v13 }
 0x3b4   : > { %630 = vst [vmem:[%s2127_s7 + $0x40] sm:$0xff] %v614_v36 }
 0x3b5   : > { %631 = vst [vmem:[%s2127_s7 + $0x48] sm:$0xff] %v615_v11 }
 0x3b6   : > { %632 = vst [vmem:[%s2127_s7 + $0x50] sm:$0xff] %v616_v22 }
 0x3b7   : > { %633 = vst [vmem:[%s2127_s7 + $0x58] sm:$0xff] %v617_v62 }
 0x3b8   : > { %634 = vst [vmem:[%s2127_s7 + $0x60] sm:$0xff] %v618_v38 }
 0x3b9   : > { %635 = vst [vmem:[%s2127_s7 + $0x68] sm:$0xff] %v619_v49 }
 0x3ba   : > { %636 = vst [vmem:[%s2127_s7 + $0x70] sm:$0xff] %v620_v61 }
 0x3bb   : > { %637 = vst [vmem:[%s2127_s7 + $0x78] sm:$0xff] %v621_v37 }
 0x3bc   : > { %1430 = shalt.err (!%p1427_p3)
}
 0x3bd   : > { %s1467_s30 = smov 128   ;;  %s1468_s5 = smov 8  }
 0x3be   : > { %1221 = dma.vmem_to_hbm [thread:$0]  (%p1532_p5), %s1054_s12, 4096, %s1056_s13, %s1040_s19, %s1467_s30, %s1467_s30, %s1468_s5  }
 0x3bf PF: > { %p1227_p4 = scmp.ge.s32.totalorder %s1465_s18, 2  ;;  %s1070_s6 = sand.u32 1, %s1453_s15  }
 0x3c0   : > { %s1071_s7 = scalar_lea.sflag [#allocation3], %s1070_s6 }
 0x3c1   : > { %p1224_p7 = pnand %p1227_p4, %p1536_p6 }
 0x3c3   : > { %p1225_p8 = pneg %p1224_p7 }
 0x3c5   : > { %1448 = dma.done.wait (%p1225_p8), %s1071_s7, 4096  }
 0x3c6   : > { %1450 = vsyncadd (%p1225_p8), %s1071_s7, 4294963200  ;;  %p14_p9 = scmp.ge.s32.totalorder %s1519_s21, 4   ;;  %s2224_s15 = smov %s1457_s16 }
 0x3c7   : > { %s2225_s16 = smov %s1461_s17  ;;  %s2226_s17 = smov %s1530_s24 }
 0x3c8   : > { %s2227_s18 = smov %s1519_s21  ;;  %16 = sbr.rel (!%p14_p9) target bundleno = 3 (0x3), region = 73 }
 0x3cd   :  { %1077 = vsyncpa [#allocation3], 1 }
 0x3ce   :  { %1079 = vsyncpa [#allocation3 + $0x1], 1 }

</bundles_post_ra>
